<compile_context>
chip_gen: v7x
topology: tpu7x:2x2x1
jax: 0.10.0
libtpu: 0.0.40
codegen_flags: <defaults>
</compile_context>

<pallas_src>
import math

import numpy as np
import jax
import jax.numpy as jnp
from jax.experimental import pallas as pl
from jax.experimental.pallas import tpu as pltpu


# ----------------------------------------------------------------------------
# Helpers / VMEM sizing
# ----------------------------------------------------------------------------
def _round_up(x, m):
    return ((x + m - 1) // m) * m


def _vmem_limits():
    """Generation-aware scoped-VMEM limit and sizing budget.

    ~half of physical VMEM: 64 MiB on v5e/v6e (128 MiB physical), 32 MiB on v7x
    (64 MiB per-TC physical).  Budget leaves headroom for Mosaic-internal scratch.
    """
    try:
        cap = int(pltpu.get_tpu_info().vmem_capacity_bytes)
    except Exception:
        cap = 64 * 1024 * 1024                # conservative fallback (v7x per-core)
    limit = max(32 * 1024 * 1024, cap // 2)
    budget = int(limit * 0.75)
    return limit, budget


def _const_block_spec(block_shape, index_map):
    """BlockSpec for a block whose index_map is constant across the grid: request
    single-buffering so the resident weight/bias do not cost 2x their size in VMEM."""
    try:
        return pl.BlockSpec(block_shape, index_map, pipeline_mode=pl.Buffered(1))
    except Exception:                          # older jax: no pipeline_mode support
        return pl.BlockSpec(block_shape, index_map)


def _choose_tm(n, fixed_bytes, per_row_bytes, budget):
    """Largest row tile (multiple of 8, <= 1024) whose VMEM working set fits the
    budget, then shrunk so the grid has >= 4 steps (>= 2 per TensorCore on v7x, so
    the x DMA / output writeback stay pipelined) and, when possible, divides n
    exactly (avoids row padding and a post-kernel row slice)."""
    tm = 1024
    while tm > 8 and fixed_bytes + tm * per_row_bytes > budget:
        tm //= 2
    if n >= 32:
        tm = min(tm, max(8, _round_up(pl.cdiv(n, 4), 8)))
    tm = min(tm, max(8, _round_up(n, 8)))
    if n % 8 == 0:
        while n % tm:
            tm -= 8
    return tm


# ----------------------------------------------------------------------------
# Kernel 1: resident weight, rows-only grid, exact-width output
# ----------------------------------------------------------------------------
def _hyplinear_resident_kernel(x_ref, w_ref, b_ref, o_ref):
    # x_ref : (tm, K)      bf16 input rows (K = in_features+1, unpadded in HBM)
    # w_ref : (K, W_pad)   bf16 transposed weight, real columns at [1 : OUT+1]
    # b_ref : (1, W_pad)   f32 bias, real entries at [1 : OUT+1]
    # o_ref : (tm, OUT+1)  f32 exact output tile (col 0 = time, cols 1.. = space)
    out_cols = o_ref.shape[-1]                                     # OUT + 1 (static)
    x_space = jnp.dot(x_ref[...], w_ref[...],
                      preferred_element_type=jnp.float32) + b_ref[...]   # (tm, W_pad)
    # Column 0 and the pad columns are exactly zero (zero weight cols + zero bias),
    # so the full-width reduction equals the reduction over the real OUT columns.
    sumsq = jnp.sum(x_space * x_space, axis=-1, keepdims=True) + 1.0      # (tm, 1)
    s = jnp.sqrt(x_space)          # elementwise sqrt (NaN for negatives, as in PyTorch)
    o_ref[...] = s[:, :out_cols]   # full-tile store; lane 0 (== 0) fixed up below
    # stored time value = sqrt(x_time) = (sumsq) ** 0.25
    o_ref[:, 0:1] = jnp.sqrt(jnp.sqrt(sumsq))


def _hyplinear_resident(x2d, w_padded, b_row, *, tm, out_cols, vmem_limit):
    n, k = x2d.shape
    k2, w_pad = w_padded.shape
    return pl.pallas_call(
        _hyplinear_resident_kernel,
        out_shape=jax.ShapeDtypeStruct((n, out_cols), jnp.float32),
        grid_spec=pltpu.PrefetchScalarGridSpec(
            num_scalar_prefetch=0,
            grid=(n // tm,),
            in_specs=[
                pl.BlockSpec((tm, k), lambda i: (i, 0)),
                _const_block_spec((k2, w_pad), lambda i: (0, 0)),   # single-buffered
                _const_block_spec((1, w_pad), lambda i: (0, 0)),    # single-buffered
            ],
            out_specs=pl.BlockSpec((tm, out_cols), lambda i: (i, 0)),
        ),
        compiler_params=pltpu.CompilerParams(
            dimension_semantics=("parallel",),
            vmem_limit_bytes=vmem_limit,
        ),
    )(x2d, w_padded, b_row)


# ----------------------------------------------------------------------------
# Kernel 2: column-tiled (large layers / small VMEM), time column accumulated
# ----------------------------------------------------------------------------
def _hyplinear_tiled_kernel(x_ref, w_ref, b_ref, space_ref, time_ref):
    # x_ref    : (tm, K)   bf16 (resident across the column-tile axis)
    # w_ref    : (K, TW)   bf16 column tile of the transposed weight
    # b_ref    : (1, TW)   f32
    # space_ref: (tm, TW)  f32 sqrt(x_space) column tile
    # time_ref : (tm, 1)   f32 resident accumulator -> (sum(x_space^2)+1) ** 0.25
    j = pl.program_id(1)
    x_space = jnp.dot(x_ref[...], w_ref[...],
                      preferred_element_type=jnp.float32) + b_ref[...]

    @pl.when(j == 0)
    def _():
        time_ref[...] = jnp.ones_like(time_ref)        # the "+ 1.0" term

    time_ref[...] += jnp.sum(x_space * x_space, axis=-1, keepdims=True)
    space_ref[...] = jnp.sqrt(x_space)                 # pad cols are exactly zero

    @pl.when(j == pl.num_programs(1) - 1)
    def _():
        # x_time = sqrt(acc); stored value = sqrt(x_time) = acc ** 0.25
        time_ref[...] = jnp.sqrt(jnp.sqrt(time_ref[...]))


def _hyplinear_tiled(x2d, w_space, b_space, *, tm, tw, vmem_limit):
    n, k = x2d.shape
    k2, w_sp = w_space.shape
    return pl.pallas_call(
        _hyplinear_tiled_kernel,
        out_shape=(jax.ShapeDtypeStruct((n, w_sp), jnp.float32),
                   jax.ShapeDtypeStruct((n, 1), jnp.float32)),
        grid_spec=pltpu.PrefetchScalarGridSpec(
            num_scalar_prefetch=0,
            grid=(n // tm, w_sp // tw),
            in_specs=[
                pl.BlockSpec((tm, k), lambda i, j: (i, 0)),   # same block across j
                pl.BlockSpec((k2, tw), lambda i, j: (0, j)),
                pl.BlockSpec((1, tw), lambda i, j: (0, j)),
            ],
            out_specs=(
                pl.BlockSpec((tm, tw), lambda i, j: (i, j)),
                pl.BlockSpec((tm, 1), lambda i, j: (i, 0)),   # resident accumulator
            ),
        ),
        compiler_params=pltpu.CompilerParams(
            dimension_semantics=("parallel", "arbitrary"),
            vmem_limit_bytes=vmem_limit,
        ),
    )(x2d, w_space, b_space)


# ----------------------------------------------------------------------------
# Plain-JAX glue: Lorentz expmap0 preprocessing (only used if x_manifold != 'hyp')
# ----------------------------------------------------------------------------
_EXP_MAX_NORM = 10.0


def _expmap0_project(x):
    # x: (..., d+1). Mirrors expmap0(..., project1=True) with k = 1.0.
    u0 = x[..., 0:1]
    ur = x[..., 1:]
    inner = -(u0 * u0) + jnp.sum(ur * ur, axis=-1, keepdims=True)
    nomin = jnp.sqrt(jnp.maximum(inner, 1e-9))        # _norm with LeakyClamp forward
    u = x / nomin
    nomin = jnp.minimum(nomin, _EXP_MAX_NORM)
    l_v = jnp.cosh(nomin)
    r_v = jnp.sinh(nomin) * u
    p = jnp.concatenate([l_v + r_v[..., 0:1], r_v[..., 1:]], axis=-1)
    right = p[..., 1:]                                 # project(k=1.0)
    left = jnp.sqrt(1.0 + jnp.sum(right * right, axis=-1, keepdims=True))
    return jnp.concatenate([left, right], axis=-1)


# ----------------------------------------------------------------------------
# Module wrapper
# ----------------------------------------------------------------------------
class HypLinearPallas:
    """JAX/Pallas port of HypLinear (Lorentz manifold, k=1.0). Forward only."""

    def __init__(self, in_features, out_features, key, bias=True, force_tiled=False):
        self.in_features = in_features + 1            # matches PyTorch __init__
        self.out_features = out_features
        K, OUT = self.in_features, self.out_features
        self.out_cols = OUT + 1

        # xavier_uniform_ with gain=sqrt(2)
        bound = math.sqrt(2.0) * math.sqrt(6.0 / (K + OUT))
        self.weight = jax.random.uniform(key, (OUT, K), minval=-bound, maxval=bound,
                                         dtype=jnp.float32)
        # NOTE: bias=False still uses a zero bias (numerically identical to no bias).
        self.bias = jnp.zeros((OUT,), jnp.float32)

        self.vmem_limit, self.vmem_budget = _vmem_limits()

        # ---- choose kernel strategy from the VMEM budget --------------------
        k_lane = _round_up(K, 128)                    # VMEM lane footprint of an x row
        self.w_pad = _round_up(OUT + 1, 128)          # resident-path matmul width
        # TODO(synk): when OUT % 128 == 0 the "+1" column costs one extra all-zero
        # 128-wide weight tile (~25% MXU waste at OUT=512) on the resident path; an
        # OUT-wide matmul plus a separate time store would remove it.
        self._res_fixed = _round_up(K, 16) * self.w_pad * 2 + self.w_pad * 4  # 1x-buffered
        self._res_per_row = 2 * (k_lane * 2 + self.w_pad * 4)
        self.use_tiled = bool(force_tiled) or (
            self._res_fixed + 8 * self._res_per_row > self.vmem_budget)

        if not self.use_tiled:
            # Pre-transposed bf16 weight at COLUMN OFFSET 1: the matmul leaves lane 0
            # zero so the kernel drops the time value there with one column store
            # (no roll / lane concatenate; exact-width output, no wrapper slice).
            w_t = jnp.zeros((K, self.w_pad), jnp.float32)
            w_t = w_t.at[:, 1:OUT + 1].set(self.weight.T)
            self.w_res = w_t.astype(jnp.bfloat16)
            b_row = jnp.zeros((1, self.w_pad), jnp.float32)
            if bias:
                b_row = b_row.at[0, 1:OUT + 1].set(self.bias)
            self.b_res = b_row
        else:
            # Column-tiled path: plain (K, round_up(OUT,128)) transposed weight; time
            # is a separate 1-wide output, concatenated outside (one extra pass, only
            # paid on the large-layer path where the matmul dominates).
            self.w_sp = _round_up(OUT, 128)
            w_t = jnp.zeros((K, self.w_sp), jnp.float32)
            w_t = w_t.at[:, :OUT].set(self.weight.T)
            self.w_tiled = w_t.astype(jnp.bfloat16)
            b_row = jnp.zeros((1, self.w_sp), jnp.float32)
            if bias:
                b_row = b_row.at[0, :OUT].set(self.bias)
            self.b_tiled = b_row

    def __call__(self, x, x_manifold="hyp"):
        if x_manifold != "hyp":
            ones = jnp.ones_like(x[..., 0:1])
            x = jnp.concatenate([ones, x], axis=-1)
            x = _expmap0_project(x)

        lead = x.shape[:-1]
        k = x.shape[-1]
        assert k == self.in_features
        n = int(np.prod(lead)) if lead else 1
        K, OUT = self.in_features, self.out_features

        # Single pass over x: flatten (free) + cast to bf16.  No K zero-padding in
        # HBM — the kernels take the full-K block (last block dim == full array dim).
        # NOTE: bf16 inputs/weights halve HBM traffic & run the MXU at full rate but
        # add ~1e-2-level relative error vs the f32 PyTorch layer.
        x2d = x.reshape(n, k).astype(jnp.bfloat16)

        if not self.use_tiled:
            tm = _choose_tm(n, self._res_fixed, self._res_per_row, self.vmem_budget)
            n_pad = _round_up(n, tm)
            if n_pad != n:                       # ragged row count only
                x2d = jnp.pad(x2d, ((0, n_pad - n), (0, 0)))
            out = _hyplinear_resident(x2d, self.w_res, self.b_res, tm=tm,
                                      out_cols=self.out_cols,
                                      vmem_limit=self.vmem_limit)
            if n_pad != n:
                out = out[:n]
            return out.reshape(*lead, self.out_cols)

        # ---- column-tiled path (large layers / small VMEM) -------------------
        k_lane = _round_up(K, 128)
        tw = 128                                 # prefer >=256-wide W tiles if they fit
        for cand in (512, 256):
            if self.w_sp % cand == 0:
                fixed = 2 * (_round_up(K, 16) * cand * 2 + cand * 4)
                per_row = 2 * (k_lane * 2 + cand * 4 + 4)
                if fixed + 8 * per_row <= self.vmem_budget:
                    tw = cand
                    break
        t_fixed = 2 * (_round_up(K, 16) * tw * 2 + tw * 4)
        t_per_row = 2 * (k_lane * 2 + tw * 4 + 4)
        tm = _choose_tm(n, t_fixed, t_per_row, self.vmem_budget)
        n_pad = _round_up(n, tm)
        if n_pad != n:
            x2d = jnp.pad(x2d, ((0, n_pad - n), (0, 0)))
        space, time = _hyplinear_tiled(x2d, self.w_tiled, self.b_tiled,
                                       tm=tm, tw=tw, vmem_limit=self.vmem_limit)
        out = jnp.concatenate([time[:n], space[:n, :OUT]], axis=-1)
        return out.reshape(*lead, self.out_cols)


# ----------------------------------------------------------------------------
# Reference (pure jnp, same bf16 inputs as the kernel) for sanity checks
# ----------------------------------------------------------------------------
def _reference(x, weight, bias):
    xb = x.astype(jnp.bfloat16)
    wb = weight.astype(jnp.bfloat16)
    lead = x.shape[:-1]
    x_space = jnp.dot(xb.reshape(-1, xb.shape[-1]), wb.T,
                      preferred_element_type=jnp.float32)
    x_space = x_space.reshape(*lead, -1) + bias
    x_time = jnp.sqrt(jnp.sum(x_space ** 2, axis=-1, keepdims=True) + 1.0)
    out = jnp.concatenate([x_time, x_space], axis=-1)
    return jnp.sqrt(out)


if __name__ == "__main__":
    key = jax.random.PRNGKey(0)
    k_w, k_x, k_w2, k_x2 = jax.random.split(key, 4)

    # --- Test 1: small layer -> resident-weight kernel, exact-width output ----
    batch, seq = 2, 8
    in_features, out_features = 31, 32          # kernel sees K = in_features+1 = 32
    layer = HypLinearPallas(in_features, out_features, k_w, bias=True)
    # input already lives on the hyperboloid (x_manifold='hyp'): last dim = K
    x = jax.random.normal(k_x, (batch, seq, in_features + 1), dtype=jnp.float32)
    y = jax.block_until_ready(layer(x))
    assert y.shape == (batch, seq, out_features + 1)
    y_ref = _reference(x, layer.weight, layer.bias)
    # NaNs (sqrt of negative x_space entries, as in PyTorch) are intentional and
    # appear identically in kernel and reference.
    np.testing.assert_allclose(np.nan_to_num(np.asarray(y)),
                               np.nan_to_num(np.asarray(y_ref)),
                               rtol=1e-3, atol=1e-3)

    # --- Test 2: force the column-tiled kernel (large-layer / small-VMEM path) --
    batch2, seq2 = 4, 16
    in2, out2 = 63, 384                          # W tiles of 128 -> 3 column tiles
    layer2 = HypLinearPallas(in2, out2, k_w2, bias=True, force_tiled=True)
    x2 = jax.random.normal(k_x2, (batch2, seq2, in2 + 1), dtype=jnp.float32)
    y2 = jax.block_until_ready(layer2(x2))
    assert y2.shape == (batch2, seq2, out2 + 1)
    y2_ref = _reference(x2, layer2.weight, layer2.bias)
    np.testing.assert_allclose(np.nan_to_num(np.asarray(y2)),
                               np.nan_to_num(np.asarray(y2_ref)),
                               rtol=1e-3, atol=1e-3)

    print("KERNEL_OK")
</pallas_src>

<mosaic_0001>
module attributes {stable_mosaic.version = 11 : i64} {
  func.func @_hyplinear_resident_kernel(%arg0: i32, %arg1: memref<16x32xbf16, #tpu.memory_space<vmem>>, %arg2: memref<32x128xbf16, #tpu.memory_space<vmem>>, %arg3: memref<1x128xf32, #tpu.memory_space<vmem>>, %arg4: memref<16x33xf32, #tpu.memory_space<vmem>>) attributes {dimension_semantics = [#tpu.dimension_semantics<parallel>], iteration_bounds = array<i64: 1>, scalar_prefetch = 0 : i64, scratch_operands = 0 : i64, tpu.core_type = #tpu.core_type<tc>, window_params = [{transform_indices = @transform_0, window_bounds = array<i64: 16, 32>}, {pipeline_mode = #tpu.pipeline_mode<synchronous>, transform_indices = @transform_1, window_bounds = array<i64: 32, 128>}, {pipeline_mode = #tpu.pipeline_mode<synchronous>, transform_indices = @transform_2, window_bounds = array<i64: 1, 128>}, {transform_indices = @transform_3, window_bounds = array<i64: 16, 33>}]} {
    %c0 = arith.constant 0 : index
    %c0_0 = arith.constant 0 : index
    %0 = vector.load %arg1[%c0, %c0_0] : memref<16x32xbf16, #tpu.memory_space<vmem>>, vector<16x32xbf16>
    %c0_1 = arith.constant 0 : index
    %c0_2 = arith.constant 0 : index
    %1 = vector.load %arg2[%c0_1, %c0_2] : memref<32x128xbf16, #tpu.memory_space<vmem>>, vector<32x128xbf16>
    %cst = arith.constant dense<0.000000e+00> : vector<16x128xf32>
    %2 = tpu.matmul %0, %1, %cst {dimension_numbers = #tpu.dot_dimension_numbers<[1], [0], [0], [1], [0, 0, 1, 1], [], []>} : vector<16x32xbf16>, vector<32x128xbf16>, vector<16x128xf32> -> vector<16x128xf32>
    %c0_3 = arith.constant 0 : index
    %c0_4 = arith.constant 0 : index
    %3 = vector.load %arg3[%c0_3, %c0_4] : memref<1x128xf32, #tpu.memory_space<vmem>>, vector<1x128xf32>
    %4 = vector.broadcast %3 : vector<1x128xf32> to vector<16x128xf32>
    %5 = arith.addf %2, %4 : vector<16x128xf32>
    %6 = arith.mulf %5, %5 : vector<16x128xf32>
    %cst_5 = arith.constant dense<0.000000e+00> : vector<16xf32>
    %7 = vector.multi_reduction <add>, %6, %cst_5 [1] : vector<16x128xf32> to vector<16xf32>
    %8 = vector.shape_cast %7 : vector<16xf32> to vector<16x1xf32>
    %cst_6 = arith.constant 1.000000e+00 : f32
    %9 = vector.broadcast %cst_6 : f32 to vector<16x1xf32>
    %10 = arith.addf %8, %9 : vector<16x1xf32>
    %11 = math.sqrt %5 : vector<16x128xf32>
    %12 = vector.extract_strided_slice %11 {offsets = [0, 0], sizes = [16, 33], strides = [1, 1]} : vector<16x128xf32> to vector<16x33xf32>
    %c0_7 = arith.constant 0 : index
    %c0_8 = arith.constant 0 : index
    %13 = vector.load %arg4[%c0_7, %c0_8] : memref<16x33xf32, #tpu.memory_space<vmem>>, vector<16x33xf32>
    tpu.vector_store %arg4[%c0_7, %c0_8], %12 {strides = array<i32>} : memref<16x33xf32, #tpu.memory_space<vmem>>, vector<16x33xf32>,
    %14 = math.sqrt %10 : vector<16x1xf32>
    %15 = math.sqrt %14 : vector<16x1xf32>
    %c0_9 = arith.constant 0 : index
    %c0_10 = arith.constant 0 : index
    %16 = vector.load %arg4[%c0_9, %c0_10] : memref<16x33xf32, #tpu.memory_space<vmem>>, vector<16x1xf32>
    tpu.vector_store %arg4[%c0_9, %c0_10], %15 {strides = array<i32>} : memref<16x33xf32, #tpu.memory_space<vmem>>, vector<16x1xf32>,
    return
  }
  func.func @transform_0(%arg0: i32) -> (i32, i32) {
    %c0_i32 = arith.constant 0 : i32
    %c0_i32_0 = arith.constant 0 : i32
    return %arg0, %c0_i32 : i32, i32
  }
  func.func @transform_1(%arg0: i32) -> (i32, i32) {
    %c0_i32 = arith.constant 0 : i32
    %c0_i32_0 = arith.constant 0 : i32
    %c0_i32_1 = arith.constant 0 : i32
    return %c0_i32, %c0_i32_0 : i32, i32
  }
  func.func @transform_2(%arg0: i32) -> (i32, i32) {
    %c0_i32 = arith.constant 0 : i32
    %c0_i32_0 = arith.constant 0 : i32
    %c0_i32_1 = arith.constant 0 : i32
    return %c0_i32, %c0_i32_0 : i32, i32
  }
  func.func @transform_3(%arg0: i32) -> (i32, i32) {
    %c0_i32 = arith.constant 0 : i32
    %c0_i32_0 = arith.constant 0 : i32
    return %arg0, %c0_i32 : i32, i32
  }
}

</mosaic_0001>

<bundles_post_ra>
// kernel: tpu_custom_call.1
= control target key start
LH: loop header
LB: loop body
LE: loop exit
PB: predicated region body
PF: predicated region fallthrough
CT: control target
= control target key end

     0   :  { %8 = vsyncpa [#allocation3], 0  ;;  %s373_s0 = inlined_call_operand.hbm [shape: bf16[16,32], index: 0, kind: input, shape index: {}]   ;;  %s374_s1 = inlined_call_operand.hbm [shape: bf16[32,128], index: 1, kind: input, shape index: {}]   ;;  %s375_s2 = inlined_call_operand.vmem [shape: f32[1,128], index: 2, kind: input, shape index: {}]   ;;  %s376_s3 = inlined_call_operand.hbm [shape: f32[16,33], index: 3, kind: output, shape index: {}]  }
   0x1   :  { %9 = vsyncpa [#allocation6], 0 }
   0x2   :  { %10 = vsyncpa [#allocation4], 0  ;;  %s305_s12 = smov [#allocation2]   ;;  %s233_s16 = scalar_lea.hbm %s373_s0, 128 }
   0x3   :  { %s16_s13 = sshll.u32 %s305_s12, 4  ;;  %p234_p0 = scmp.ne.s32.totalorder %s373_s0, %s233_s16  ;;  %s17_s13 = int_to_ptr.vmem [resolvable:$true] %s16_s13 }
   0x4   :  { %p237_p1 = scmp.lt.u32.totalorder %s233_s16, %s373_s0 }
   0x6   :  { %p239_p2 = pnand %p237_p1, %p234_p0 }
   0x8   :  { %242 = shalt.err (!%p239_p2)
}
   0x9   :  { %s243_s21 = scalar_lea.vmem %s17_s13, 128  ;;  %p248_p4 = scmp.lt.s32.totalorder %s17_s13, %s17_s13 }
   0xa   :  { %p244_p3 = scmp.ne.s32.totalorder %s17_s13, %s243_s21  ;;  %p249_p5 = scmp.lt.s32.totalorder %s243_s21, %s243_s21 }
   0xc   :  { %p250_p6 = por %p249_p5, %p248_p4 }
   0xe   :  { %p251_p7 = pnand %p250_p6, %p244_p3 }
  0x10   :  { %254 = shalt.err (!%p251_p7)
}
  0x11   :  { %s306_s22 = smov 64   ;;  %s307_s23 = smov 4  }
  0x12   :  { %22 = dma.hbm_to_vmem [thread:$0]  %s373_s0, 128, %s17_s13, [#allocation3], %s306_s22, %s306_s22, %s307_s23  }
  0x13   :  { %s308_s26 = smov [#allocation5]   ;;  %s255_s30 = scalar_lea.hbm %s374_s1, 256 }
  0x14   :  { %s28_s27 = sshll.u32 %s308_s26, 4  ;;  %p256_p8 = scmp.ne.s32.totalorder %s374_s1, %s255_s30  ;;  %s29_s27 = int_to_ptr.vmem [resolvable:$true] %s28_s27 }
  0x15   :  { %p259_p9 = scmp.lt.u32.totalorder %s255_s30, %s374_s1 }
  0x17   :  { %p261_p10 = pnand %p259_p9, %p256_p8 }
  0x19   :  { %264 = shalt.err (!%p261_p10)
}
  0x1a   :  { %s265_s8 = scalar_lea.vmem %s29_s27, 256  ;;  %p270_p12 = scmp.lt.s32.totalorder %s29_s27, %s29_s27 }
  0x1b   :  { %p266_p11 = scmp.ne.s32.totalorder %s29_s27, %s265_s8  ;;  %p271_p13 = scmp.lt.s32.totalorder %s265_s8, %s265_s8 }
  0x1d   :  { %p272_p0 = por %p271_p13, %p270_p12 }
  0x1f   :  { %p273_p1 = pnand %p272_p0, %p266_p11 }
  0x21   :  { %276 = shalt.err (!%p273_p1)
}
  0x22   :  { %34 = dma.hbm_to_vmem [thread:$0]  %s374_s1, 256, %s29_s27, [#allocation6], %s306_s22, %s306_s22, %s307_s23  }
  0x23   :  { %299 = dma.done.wait [#allocation3], 128  }
  0x24   :  { %300 = vsyncadd [#allocation3], 4294967168 }
  0x25   :  { %301 = dma.done.wait [#allocation6], 256  }
  0x26   :  { %302 = vsyncadd [#allocation6], 4294967040  ;;  %v309_v0 = vmov 0.0   ;;  %vm310_vm0 = vmmov 0   ;;  %v218_v1 = vld [vmem:[#allocation5] sm:$0xff]   ;;  %v219_v2 = vld [vmem:[#allocation5 + $0x8] sm:$0xff]  }
  0x27   :  { %201 = vmatprep.subr.bf16.mxu0 %v309_v0  ;;  %205 = vmatprep.mubr.msk.bf16.mxu0 %vm310_vm0, %v309_v0  ;;  %v220_v3 = vld [vmem:[#allocation2] sm:$0xff]   ;;  %vm74_vm1 = vcmask 261120   ;;  %vm141_vm3 = vcmask 269312   ;;  %vm172_vm12 = vcmask 7168   ;;  %s311_s1 = smov [#allocation7]  }
  0x28   :  { %202 = vmatpush3.bf16.msra.mxu0 %v218_v1  ;;  %v193_v4 = vld [vmem:[%s375_s2] ss:$0 sm:$0xff]  ;;  %s180_s2 = sshll.u32 %s311_s1, 4  ;;  %s181_s2 = int_to_ptr.vmem [resolvable:$true] %s180_s2 }
  0x29   :  { %203 = vmatprep.subr.bf16.mxu0 %v309_v0  ;;  %s277_s12 = scalar_lea.vmem %s181_s2, 256  ;;  %p282_p3 = scmp.lt.s32.totalorder %s181_s2, %s181_s2 }
  0x2a   :  { %p278_p2 = scmp.ne.s32.totalorder %s181_s2, %s277_s12  ;;  %p283_p4 = scmp.lt.s32.totalorder %s277_s12, %s277_s12 }
  0x2c   :  { %204 = vmatpush3.bf16.msra.mxu0 %v219_v2  ;;  %p284_p5 = por %p283_p4, %p282_p3 }
  0x2e   :  { %p285_p6 = pnand %p284_p5, %p278_p2 }
  0x2f   :  { %206 = vmatmul.mubr.msk.bf16.vlgmr.msra.gmra.mrb[0].mxu0 %vm74_vm1, %v220_v3 }
 0x102   :  { %v112_v5 = vpop.f32.mrb[0].mxu0 }
 0x103   :  { %v113_v6 = vadd.f32 %v193_v4, %v112_v5  ;;  %v207_v7 = vpop.f32.mrb[1].mxu0 }
 0x104   :  { %v115_v8 = vpop.f32.mrb[2].mxu0 }
 0x105   :  { %221 = vrsqrt.f32 %v113_v6  ;;  %v116_v9 = vadd.f32 %v193_v4, %v115_v8  ;;  %v208_v10 = vpop.f32.mrb[3].mxu0  ;;  %v119_v11 = vmul.f32 %v113_v6, %v113_v6  ;;  %vm129_vm2 = vcmp.eq.f32.partialorder %v113_v6, inf }
 0x106   :  { %v132_v16 = vand.u32 2147483648, %v113_v6  ;;  %vm131_vm4 = vcmp.eq.f32.partialorder %v113_v6, 0.0 }
 0x107   :  { %223 = vrsqrt.f32 %v116_v9  ;;  %121 = vadd.xlane.f32.xlu0 %v119_v11  ;;  %v120_v12 = vmul.f32 %v116_v9, %v116_v9  ;;  %vm136_vm5 = vcmp.eq.f32.partialorder %v116_v9, inf  ;;  %v139_v20 = vand.u32 2147483648, %v116_v9 }
 0x108   :  { %vm138_vm6 = vcmp.eq.f32.partialorder %v116_v9, 0.0 }
 0x10b   :  { %123 = vadd.xlane.f32.xlu0 %v120_v12 }
 0x10f   :  { %v222_v13 = vpop.eup %221 }
 0x110   :  { %v128_v14 = vmul.f32 %v222_v13, %v113_v6 }
 0x111   :  { %v224_v15 = vpop.eup %223 }
 0x112   :  { %v130_v17 = vsel %vm129_vm2, %v113_v6, %v128_v14  ;;  %v135_v18 = vmul.f32 %v224_v15, %v116_v9 }
 0x113   :  { %v133_v19 = vsel %vm131_vm4, %v132_v16, %v130_v17 }
 0x114   :  { %v137_v21 = vsel %vm136_vm5, %v116_v9, %v135_v18  ;;  %142 = vst.msk [vmem:[#allocation7] sm:$0xff] %vm141_vm3, %v133_v19 }
 0x115   :  { %v140_v22 = vsel %vm138_vm6, %v139_v20, %v137_v21 }
 0x116   :  { %143 = vst.msk [vmem:[#allocation7 + $0x8] sm:$0xff] %vm141_vm3, %v140_v22 }
 0x194   :  { %v122_v23 = vpop.xlane.xlu0 %121 }
 0x195   :  { %v125_v24 = vadd.f32 1.0, %v122_v23 }
 0x197   :  { %225 = vrsqrt.f32 %v125_v24  ;;  %vm146_vm7 = vcmp.eq.f32.partialorder %v125_v24, inf  ;;  %v149_v29 = vand.u32 2147483648, %v125_v24  ;;  %vm148_vm8 = vcmp.eq.f32.partialorder %v125_v24, 0.0 }
 0x198   :  { %v124_v25 = vpop.xlane.xlu0 %123 }
 0x199   :  { %v126_v26 = vadd.f32 1.0, %v124_v25 }
 0x19b   :  { %227 = vrsqrt.f32 %v126_v26  ;;  %vm153_vm9 = vcmp.eq.f32.partialorder %v126_v26, inf  ;;  %v156_v34 = vand.u32 2147483648, %v126_v26  ;;  %vm155_vm10 = vcmp.eq.f32.partialorder %v126_v26, 0.0 }
 0x1a1   :  { %v226_v27 = vpop.eup %225 }
 0x1a2   :  { %v145_v28 = vmul.f32 %v226_v27, %v125_v24 }
 0x1a4   :  { %v147_v30 = vsel %vm146_vm7, %v125_v24, %v145_v28 }
 0x1a5   :  { %v228_v31 = vpop.eup %227  ;;  %v150_v32 = vsel %vm148_vm8, %v149_v29, %v147_v30 }
 0x1a6   :  { %229 = vrsqrt.f32 %v150_v32  ;;  %v152_v33 = vmul.f32 %v228_v31, %v126_v26  ;;  %vm160_vm11 = vcmp.eq.f32.partialorder %v150_v32, inf  ;;  %v163_v39 = vand.u32 2147483648, %v150_v32 }
 0x1a7   :  { %vm162_vm13 = vcmp.eq.f32.partialorder %v150_v32, 0.0 }
 0x1a8   :  { %v154_v35 = vsel %vm153_vm9, %v126_v26, %v152_v33 }
 0x1a9   :  { %v157_v36 = vsel %vm155_vm10, %v156_v34, %v154_v35 }
 0x1aa   :  { %231 = vrsqrt.f32 %v157_v36  ;;  %vm167_vm14 = vcmp.eq.f32.partialorder %v157_v36, inf  ;;  %v170_v44 = vand.u32 2147483648, %v157_v36  ;;  %vm169_vm15 = vcmp.eq.f32.partialorder %v157_v36, 0.0 }
 0x1b0   :  { %v230_v37 = vpop.eup %229 }
 0x1b1   :  { %v159_v38 = vmul.f32 %v230_v37, %v150_v32 }
 0x1b3   :  { %v161_v40 = vsel %vm160_vm11, %v150_v32, %v159_v38 }
 0x1b4   :  { %v232_v41 = vpop.eup %231  ;;  %v164_v42 = vsel %vm162_vm13, %v163_v39, %v161_v40 }
 0x1b5   :  { %v166_v43 = vmul.f32 %v232_v41, %v157_v36  ;;  %173 = vst.msk [vmem:[#allocation7] sm:$0xff] %vm172_vm12, %v164_v42 }
 0x1b7   :  { %v168_v45 = vsel %vm167_vm14, %v157_v36, %v166_v43 }
 0x1b8   :  { %v171_v46 = vsel %vm169_vm15, %v170_v44, %v168_v45 }
 0x1b9   :  { %174 = vst.msk [vmem:[#allocation7 + $0x8] sm:$0xff] %vm172_vm12, %v171_v46 }
 0x1ba   :  { %288 = shalt.err (!%p285_p6)
}
 0x1bb   :  { %s289_s15 = scalar_lea.hbm %s376_s3, 256 }
 0x1bc   :  { %p290_p7 = scmp.ne.s32.totalorder %s376_s3, %s289_s15  ;;  %p293_p8 = scmp.lt.u32.totalorder %s289_s15, %s376_s3 }
 0x1be   :  { %p295_p9 = pnand %p293_p8, %p290_p7 }
 0x1c0   :  { %298 = shalt.err (!%p295_p9)
}
 0x1c1   :  { %s312_s20 = smov 128   ;;  %s313_s21 = smov 8  }
 0x1c2   :  { %186 = dma.vmem_to_hbm [thread:$0]  %s181_s2, 256, %s376_s3, [#allocation4], %s312_s20, %s312_s20, %s313_s21  }
 0x1c3   :  { %303 = dma.done.wait [#allocation4], 256  }
 0x1c4   :  { %304 = vsyncadd [#allocation4], 4294967040 }
 0x1c5   :  { %190 = vsyncpa [#allocation3], 1 }
 0x1c6   :  { %191 = vsyncpa [#allocation6], 1 }
 0x1c7   :  { %192 = vsyncpa [#allocation4], 1 }

</bundles_post_ra>
